<compile_context>
chip_gen: v5e
topology: v5e:2x2
jax: 0.10.0
libtpu: 0.0.40
codegen_flags: <defaults>
</compile_context>

<pallas_src>
import functools
import math

import jax
import jax.numpy as jnp
import numpy as np
from jax.experimental import pallas as pl
from jax.experimental.pallas import tpu as pltpu

MASK_VALUE = -1.0e9   # DiagonalMask value
LN_EPS = 1e-5         # torch.nn.LayerNorm default eps


def _layer_norm(x, gamma, beta):
    mean = jnp.mean(x, axis=-1, keepdims=True)
    var = jnp.mean((x - mean) ** 2, axis=-1, keepdims=True)   # biased, like PyTorch
    return (x - mean) * jax.lax.rsqrt(var + LN_EPS) * gamma + beta


def decoder_stack_kernel(x_ref, mask_ref, wqkv_ref, w1_ref, w2_ref, vec_ref, o_ref, *, n_heads):
    mt, emb = x_ref.shape                  # mt = batch_tile * seq
    seq = mask_ref.shape[0]
    bt = mt // seq
    hidden = w1_ref.shape[-1]
    dh = emb // n_heads
    inv_scale = 1.0 / math.sqrt(dh)        # = 1/sqrt(proj_size)

    # ---- layer carry: output block has a constant index_map over the layer axis, so it stays
    #      resident in VMEM across layers; seed it with the embeddings at layer 0. ----
    # TODO(synk): input_output_aliases could drop the HBM output copy, but Pallas does not
    #             preload output blocks, so the explicit seed from x_ref is kept for correctness.
    @pl.when(pl.program_id(1) == 0)
    def _():
        o_ref[...] = x_ref[...]

    x = o_ref[...]                         # (mt, emb) f32

    # ---- packed small per-layer params (single DMA): rows = [bqkv, b1, b2, g1, be1, g2, be2] ----
    bqkv = vec_ref[0:1, :3 * emb]
    b1 = vec_ref[1:2, :hidden]
    b2 = vec_ref[2:3, :emb]
    g1 = vec_ref[3:4, :emb]
    be1 = vec_ref[4:5, :emb]
    g2 = vec_ref[5:6, :emb]
    be2 = vec_ref[6:7, :emb]

    # ---- fused QKV projection: one (mt, E) @ (E, 3E) bf16 matmul, f32 accumulation ----
    qkv = jnp.dot(x.astype(jnp.bfloat16), wqkv_ref[...],
                  preferred_element_type=jnp.float32) + bqkv          # (mt, 3E) f32

    # fold 1/sqrt(dh) into the q third and downcast to bf16 ONCE; only the bf16 copy stays live.
    lane = jax.lax.broadcasted_iota(jnp.int32, (1, 3 * emb), 1)
    qkv_bf = (qkv * jnp.where(lane < emb, inv_scale, 1.0)).astype(jnp.bfloat16)

    add_mask = mask_ref[...][None]          # (1, S, S) additive causal mask (0 / -1e9), hoisted

    # ---- multi-head attention: per-head batched (over batch) einsums on bf16 data; head outputs
    #      are combined with a single concatenate (one lane-dense (mt, E) value, no scratch). ----
    # TODO(synk): for large n_heads / long S, switch to a head-major batched contraction with a
    #             KV-tiled online-softmax instead of the static head unroll + full (S, S) scores.
    head_outs = []
    for h in range(n_heads):
        qh = qkv_bf[:, h * dh:(h + 1) * dh].reshape(bt, seq, dh)
        kh = qkv_bf[:, emb + h * dh:emb + (h + 1) * dh].reshape(bt, seq, dh)
        vh = qkv_bf[:, 2 * emb + h * dh:2 * emb + (h + 1) * dh].reshape(bt, seq, dh)

        s = jnp.einsum('bqd,bkd->bqk', qh, kh,
                       preferred_element_type=jnp.float32) + add_mask   # (bt, S, S) f32
        s = s - jnp.max(s, axis=-1, keepdims=True)
        p = jnp.exp(s)
        p = p * pl.reciprocal(jnp.sum(p, axis=-1, keepdims=True), approx=True)
        oh = jnp.einsum('bqk,bkd->bqd', p.astype(jnp.bfloat16), vh,
                        preferred_element_type=jnp.float32)             # (bt, S, dh)
        head_outs.append(oh.reshape(mt, dh))

    att = jnp.concatenate(head_outs, axis=-1)                           # (mt, E) f32

    # residual + LayerNorm 1 (f32, VPU/EUP)
    h1 = _layer_norm(x + att, g1, be1)

    # position-wise MLP: Linear -> ReLU -> Linear (bf16 MXU operands, f32 accumulation)
    m = jnp.dot(h1.astype(jnp.bfloat16), w1_ref[...],
                preferred_element_type=jnp.float32) + b1
    m = jnp.maximum(m, 0.0)
    m = jnp.dot(m.astype(jnp.bfloat16), w2_ref[...],
                preferred_element_type=jnp.float32) + b2

    # residual + LayerNorm 2 -> new layer carry (and final output after the last layer);
    # single full-width (lane-dense) store.
    o_ref[...] = _layer_norm(h1 + m, g2, be2).astype(o_ref.dtype)


def decoder_stack_pallas(x_flat, sp, n_heads, batch, seq, batch_tile=None):
    M, E = x_flat.shape
    L = sp["wqkv"].shape[0]
    hidden = sp["w1"].shape[-1]
    W = sp["vecs"].shape[-1]
    assert E % n_heads == 0

    if batch_tile is None:
        batch_tile = batch                 # shrink on v7x (64 MiB VMEM) for large models
    assert batch % batch_tile == 0
    mt = batch_tile * seq
    assert mt % 8 == 0 or mt == M, "batch_tile * seq must be sublane (8) aligned"
    nb = batch // batch_tile

    # additive causal mask (DiagonalMask reduces to strictly-upper-triangular = -1e9), hoisted
    row = jnp.arange(seq)[:, None]
    col = jnp.arange(seq)[None, :]
    add_mask = jnp.where(col > row, MASK_VALUE, 0.0).astype(jnp.float32)   # (S, S)

    def wspec(trailing):   # stacked (L, ...) param; layer dim squeezed out of the kernel ref
        return pl.BlockSpec((None,) + tuple(trailing), lambda b, l: (l, 0, 0))

    in_specs = [
        pl.BlockSpec((mt, E), lambda b, l: (b, 0)),        # embeddings (per batch tile, loaded once/tile)
        pl.BlockSpec((seq, seq), lambda b, l: (0, 0)),     # additive causal mask (constant -> loaded once)
        wspec((E, 3 * E)),                                 # fused QKV weight (bf16)
        wspec((E, hidden)),                                # MLP in  (bf16)
        wspec((hidden, E)),                                # MLP out (bf16)
        wspec((8, W)),                                     # packed biases + LN params (one DMA / layer)
    ]

    # explicit VMEM budget: double-buffered weights + resident activation blocks + intermediates
    est = (
        2 * 2 * (E * 3 * E + E * hidden + hidden * E)      # bf16 weights, double buffered
        + 2 * 8 * W * 4                                    # packed vectors, double buffered
        + 4 * mt * E * 4                                   # x block + carry block (+ buffering)
        + mt * 3 * E * (4 + 2)                             # qkv f32 + bf16 copy
        + mt * hidden * 4                                  # MLP hidden
        + 4 * batch_tile * seq * seq * 4                   # scores / weights temporaries
        + 4 * mt * E * 4                                   # attention / LN temporaries
        + seq * seq * 4                                    # mask
    )
    vmem_limit = int(min(max(2 * est, 32 * 1024 * 1024), 64 * 1024 * 1024))

    return pl.pallas_call(
        functools.partial(decoder_stack_kernel, n_heads=n_heads),
        out_shape=jax.ShapeDtypeStruct((M, E), jnp.float32),
        grid=(nb, L),
        in_specs=in_specs,
        out_specs=pl.BlockSpec((mt, E), lambda b, l: (b, 0)),   # constant over l -> resident layer carry
        compiler_params=pltpu.CompilerParams(
            dimension_semantics=("parallel", "arbitrary"),      # batch tiles independent; layers carry a dep
            vmem_limit_bytes=vmem_limit),
    )(x_flat, add_mask, sp["wqkv"], sp["w1"], sp["w2"], sp["vecs"])


def self_attention_decoder(tokens, emb_table, pos_table, stacked_params, n_heads, batch_tile=None):
    B, T = tokens.shape
    E = emb_table.shape[1]
    # embedding gather + positional add: plain-JAX glue (gather is not a rectangular BlockSpec)
    x = jnp.take(emb_table, tokens, axis=0) + pos_table[:T][None, :, :]
    out = decoder_stack_pallas(x.reshape(B * T, E).astype(jnp.float32),
                               stacked_params, n_heads, B, T, batch_tile=batch_tile)
    return out.reshape(B, T, E)


# ----------------------- parameter stacking (per-layer -> leading layer axis) -----------------------
def stack_block_params(blocks, emb, hidden):
    """Stack per-layer params; QKV fused on the output axis; matmul weights stored in bf16;
    all small per-layer vectors packed into one (L, 8, W) f32 array for a single DMA per layer."""
    three_e = 3 * emb
    width = max(three_e, hidden, emb)
    width = ((width + 127) // 128) * 128                   # lane-aligned packed width

    vec_rows = []
    for p in blocks:
        rows = jnp.zeros((8, width), jnp.float32)
        rows = rows.at[0, :three_e].set(jnp.concatenate([p["bq"], p["bk"], p["bv"]], axis=1)[0])
        rows = rows.at[1, :hidden].set(p["b1"][0])
        rows = rows.at[2, :emb].set(p["b2"][0])
        rows = rows.at[3, :emb].set(p["g1"][0])
        rows = rows.at[4, :emb].set(p["be1"][0])
        rows = rows.at[5, :emb].set(p["g2"][0])
        rows = rows.at[6, :emb].set(p["be2"][0])
        vec_rows.append(rows)

    return dict(
        # kernel inputs
        wqkv=jnp.stack([jnp.concatenate([p["wq"], p["wk"], p["wv"]], axis=1)
                        for p in blocks]).astype(jnp.bfloat16),
        w1=jnp.stack([p["w1"] for p in blocks]).astype(jnp.bfloat16),
        w2=jnp.stack([p["w2"] for p in blocks]).astype(jnp.bfloat16),
        vecs=jnp.stack(vec_rows),
        # unpacked copies for the pure-JAX reference
        bqkv=jnp.stack([jnp.concatenate([p["bq"], p["bk"], p["bv"]], axis=1)
                        for p in blocks]).astype(jnp.float32),
        b1=jnp.stack([p["b1"] for p in blocks]).astype(jnp.float32),
        b2=jnp.stack([p["b2"] for p in blocks]).astype(jnp.float32),
        g1=jnp.stack([p["g1"] for p in blocks]).astype(jnp.float32),
        be1=jnp.stack([p["be1"] for p in blocks]).astype(jnp.float32),
        g2=jnp.stack([p["g2"] for p in blocks]).astype(jnp.float32),
        be2=jnp.stack([p["be2"] for p in blocks]).astype(jnp.float32),
    )


# ----------------------- pure-JAX reference (same bf16 matmul-operand numerics) -----------------------
def _reference_block(x, l, sp, n_heads):
    B, S, E = x.shape
    dh = E // n_heads
    inv_scale = 1.0 / math.sqrt(dh)
    qkv = jnp.einsum("bse,ef->bsf", x.astype(jnp.bfloat16), sp["wqkv"][l],
                     preferred_element_type=jnp.float32) + sp["bqkv"][l]
    q, k, v = qkv[..., :E], qkv[..., E:2 * E], qkv[..., 2 * E:]

    def split(t):
        return t.reshape(B, S, n_heads, dh).transpose(0, 2, 1, 3)

    qh = split(q * inv_scale).astype(jnp.bfloat16)
    kh = split(k).astype(jnp.bfloat16)
    vh = split(v).astype(jnp.bfloat16)
    scores = jnp.einsum("bhqd,bhkd->bhqk", qh, kh, preferred_element_type=jnp.float32)
    row = jnp.arange(S)[:, None]
    col = jnp.arange(S)[None, :]
    scores = jnp.where((col > row)[None, None], MASK_VALUE, scores)
    w = jax.nn.softmax(scores, axis=-1)
    att = jnp.einsum("bhqk,bhkd->bhqd", w.astype(jnp.bfloat16), vh,
                     preferred_element_type=jnp.float32)
    att = att.transpose(0, 2, 1, 3).reshape(B, S, E)
    h1 = _layer_norm(x + att, sp["g1"][l], sp["be1"][l])
    m = jnp.einsum("bse,eh->bsh", h1.astype(jnp.bfloat16), sp["w1"][l],
                   preferred_element_type=jnp.float32) + sp["b1"][l]
    m = jnp.maximum(m, 0.0)
    m = jnp.einsum("bsh,he->bse", m.astype(jnp.bfloat16), sp["w2"][l],
                   preferred_element_type=jnp.float32) + sp["b2"][l]
    return _layer_norm(h1 + m, sp["g2"][l], sp["be2"][l])


def reference_decoder(tokens, emb_table, pos_table, sp, n_heads):
    B, T = tokens.shape
    x = jnp.take(emb_table, tokens, axis=0) + pos_table[:T][None, :, :]
    for l in range(sp["wqkv"].shape[0]):
        x = _reference_block(x, l, sp, n_heads)
    return x


# ----------------------- deterministic parameter init -----------------------
def init_block_params(key, emb, hidden):
    ks = jax.random.split(key, 5)
    s = 0.05

    def lin(k, fan_in, fan_out):
        kw, kb = jax.random.split(k)
        return (jax.random.normal(kw, (fan_in, fan_out), jnp.float32) * s,
                jax.random.normal(kb, (1, fan_out), jnp.float32) * s)

    wq, bq = lin(ks[0], emb, emb)
    wk, bk = lin(ks[1], emb, emb)
    wv, bv = lin(ks[2], emb, emb)
    w1, b1 = lin(ks[3], emb, hidden)
    w2, b2 = lin(ks[4], hidden, emb)
    return dict(wq=wq, bq=bq, wk=wk, bk=bk, wv=wv, bv=bv,
                w1=w1, b1=b1, w2=w2, b2=b2,
                g1=jnp.ones((1, emb), jnp.float32), be1=jnp.zeros((1, emb), jnp.float32),
                g2=jnp.ones((1, emb), jnp.float32), be2=jnp.zeros((1, emb), jnp.float32))


if __name__ == "__main__":
    vocab_size, pad_index, max_seq_len = 50, 0, 8
    n_layers, emb_size, hidden_size, n_heads = 2, 32, 64, 4
    batch, seq = 2, 8

    key = jax.random.PRNGKey(0)
    k_emb, k_pos, k_tok, *k_blocks = jax.random.split(key, 3 + n_layers)

    emb_table = jax.random.normal(k_emb, (vocab_size, emb_size), jnp.float32) * 0.1
    emb_table = emb_table.at[pad_index].set(0.0)      # padding_idx row is zero, like nn.Embedding
    pos_table = jax.random.normal(k_pos, (max_seq_len, emb_size), jnp.float32) * 0.1
    tokens = jax.random.randint(k_tok, (batch, seq), 0, vocab_size)
    blocks = [init_block_params(k, emb_size, hidden_size) for k in k_blocks]
    stacked = stack_block_params(blocks, emb_size, hidden_size)

    out = self_attention_decoder(tokens, emb_table, pos_table, stacked, n_heads)
    out = jax.block_until_ready(out)

    ref = reference_decoder(tokens, emb_table, pos_table, stacked, n_heads)
    assert out.shape == (batch, seq, emb_size)
    # tolerance covers the EUP approximate reciprocal + accumulation-order differences
    np.testing.assert_allclose(np.asarray(out), np.asarray(ref), rtol=5e-3, atol=5e-3)

    print("KERNEL_OK")
</pallas_src>

<mosaic_0001>
module attributes {stable_mosaic.version = 11 : i64} {
  func.func @decoder_stack_kernel(%arg0: i32, %arg1: i32, %arg2: memref<16x32xf32, #tpu.memory_space<vmem>>, %arg3: memref<8x8xf32, #tpu.memory_space<vmem>>, %arg4: memref<1x32x96xbf16, #tpu.memory_space<vmem>>, %arg5: memref<1x32x64xbf16, #tpu.memory_space<vmem>>, %arg6: memref<1x64x32xbf16, #tpu.memory_space<vmem>>, %arg7: memref<1x8x128xf32, #tpu.memory_space<vmem>>, %arg8: memref<16x32xf32, #tpu.memory_space<vmem>>) attributes {dimension_semantics = [#tpu.dimension_semantics<parallel>, #tpu.dimension_semantics<arbitrary>], iteration_bounds = array<i64: 1, 2>, scalar_prefetch = 0 : i64, scratch_operands = 0 : i64, tpu.core_type = #tpu.core_type<tc>, window_params = [{transform_indices = @transform_0, window_bounds = array<i64: 16, 32>}, {pipeline_mode = #tpu.pipeline_mode<synchronous>, transform_indices = @transform_1, window_bounds = array<i64: 8, 8>}, {transform_indices = @transform_2, window_bounds = array<i64: 1, 32, 96>}, {transform_indices = @transform_3, window_bounds = array<i64: 1, 32, 64>}, {transform_indices = @transform_4, window_bounds = array<i64: 1, 64, 32>}, {transform_indices = @transform_5, window_bounds = array<i64: 1, 8, 128>}, {transform_indices = @transform_6, window_bounds = array<i64: 16, 32>}]} {
    %c0_i32 = arith.constant 0 : i32
    %0 = arith.cmpi eq, %arg1, %c0_i32 : i32
    %1 = arith.extui %0 : i1 to i32
    %c0_i32_0 = arith.constant 0 : i32
    %2 = arith.cmpi ne, %1, %c0_i32_0 : i32
    scf.if %2 {
      %c0_61 = arith.constant 0 : index
      %c0_62 = arith.constant 0 : index
      %185 = vector.load %arg2[%c0_61, %c0_62] : memref<16x32xf32, #tpu.memory_space<vmem>>, vector<16x32xf32>
      %c0_63 = arith.constant 0 : index
      %c0_64 = arith.constant 0 : index
      %186 = vector.load %arg8[%c0_63, %c0_64] : memref<16x32xf32, #tpu.memory_space<vmem>>, vector<16x32xf32>
      tpu.vector_store %arg8[%c0_63, %c0_64], %185 {strides = array<i32>} : memref<16x32xf32, #tpu.memory_space<vmem>>, vector<16x32xf32>,
    } else {
    }
    %c0 = arith.constant 0 : index
    %c0_1 = arith.constant 0 : index
    %3 = vector.load %arg8[%c0, %c0_1] : memref<16x32xf32, #tpu.memory_space<vmem>>, vector<16x32xf32>
    %c0_2 = arith.constant 0 : index
    %c0_3 = arith.constant 0 : index
    %c0_4 = arith.constant 0 : index
    %4 = vector.load %arg7[%c0_2, %c0_3, %c0_4] : memref<1x8x128xf32, #tpu.memory_space<vmem>>, vector<1x1x96xf32>
    %5 = vector.shape_cast %4 : vector<1x1x96xf32> to vector<1x96xf32>
    %c0_5 = arith.constant 0 : index
    %c1 = arith.constant 1 : index
    %c0_6 = arith.constant 0 : index
    %6 = vector.load %arg7[%c0_5, %c1, %c0_6] : memref<1x8x128xf32, #tpu.memory_space<vmem>>, vector<1x1x64xf32>
    %7 = vector.shape_cast %6 : vector<1x1x64xf32> to vector<1x64xf32>
    %c0_7 = arith.constant 0 : index
    %c2 = arith.constant 2 : index
    %c0_8 = arith.constant 0 : index
    %8 = vector.load %arg7[%c0_7, %c2, %c0_8] : memref<1x8x128xf32, #tpu.memory_space<vmem>>, vector<1x1x32xf32>
    %9 = vector.shape_cast %8 : vector<1x1x32xf32> to vector<1x32xf32>
    %c0_9 = arith.constant 0 : index
    %c3 = arith.constant 3 : index
    %c0_10 = arith.constant 0 : index
    %10 = vector.load %arg7[%c0_9, %c3, %c0_10] : memref<1x8x128xf32, #tpu.memory_space<vmem>>, vector<1x1x32xf32>
    %11 = vector.shape_cast %10 : vector<1x1x32xf32> to vector<1x32xf32>
    %c0_11 = arith.constant 0 : index
    %c4 = arith.constant 4 : index
    %c0_12 = arith.constant 0 : index
    %12 = vector.load %arg7[%c0_11, %c4, %c0_12] : memref<1x8x128xf32, #tpu.memory_space<vmem>>, vector<1x1x32xf32>
    %13 = vector.shape_cast %12 : vector<1x1x32xf32> to vector<1x32xf32>
    %c0_13 = arith.constant 0 : index
    %c5 = arith.constant 5 : index
    %c0_14 = arith.constant 0 : index
    %14 = vector.load %arg7[%c0_13, %c5, %c0_14] : memref<1x8x128xf32, #tpu.memory_space<vmem>>, vector<1x1x32xf32>
    %15 = vector.shape_cast %14 : vector<1x1x32xf32> to vector<1x32xf32>
    %c0_15 = arith.constant 0 : index
    %c6 = arith.constant 6 : index
    %c0_16 = arith.constant 0 : index
    %16 = vector.load %arg7[%c0_15, %c6, %c0_16] : memref<1x8x128xf32, #tpu.memory_space<vmem>>, vector<1x1x32xf32>
    %17 = vector.shape_cast %16 : vector<1x1x32xf32> to vector<1x32xf32>
    %18 = arith.truncf %3 : vector<16x32xf32> to vector<16x32xbf16>
    %c0_17 = arith.constant 0 : index
    %c0_18 = arith.constant 0 : index
    %c0_19 = arith.constant 0 : index
    %19 = vector.load %arg4[%c0_17, %c0_18, %c0_19] : memref<1x32x96xbf16, #tpu.memory_space<vmem>>, vector<1x32x96xbf16>
    %20 = vector.shape_cast %19 : vector<1x32x96xbf16> to vector<32x96xbf16>
    %cst = arith.constant dense<0.000000e+00> : vector<16x96xf32>
    %21 = tpu.matmul %18, %20, %cst {dimension_numbers = #tpu.dot_dimension_numbers<[1], [0], [0], [1], [0, 0, 1, 1], [], []>} : vector<16x32xbf16>, vector<32x96xbf16>, vector<16x96xf32> -> vector<16x96xf32>
    %22 = vector.broadcast %5 : vector<1x96xf32> to vector<16x96xf32>
    %23 = arith.addf %21, %22 : vector<16x96xf32>
    %24 = tpu.iota {dimensions = array<i32: 1>} : vector<1x96xi32>
    %c32_i32 = arith.constant 32 : i32
    %25 = vector.broadcast %c32_i32 : i32 to vector<1x96xi32>
    %26 = arith.cmpi slt, %24, %25 : vector<1x96xi32>
    %cst_20 = arith.constant 0.353553385 : f32
    %cst_21 = arith.constant 1.000000e+00 : f32
    %27 = vector.broadcast %cst_20 : f32 to vector<1x96xf32>
    %28 = vector.broadcast %cst_21 : f32 to vector<1x96xf32>
    %29 = arith.select %26, %27, %28 : vector<1x96xi1>, vector<1x96xf32>
    %30 = vector.broadcast %29 : vector<1x96xf32> to vector<16x96xf32>
    %31 = arith.mulf %23, %30 : vector<16x96xf32>
    %32 = arith.truncf %31 : vector<16x96xf32> to vector<16x96xbf16>
    %c0_22 = arith.constant 0 : index
    %c0_23 = arith.constant 0 : index
    %33 = vector.load %arg3[%c0_22, %c0_23] : memref<8x8xf32, #tpu.memory_space<vmem>>, vector<8x8xf32>
    %34 = vector.shape_cast %33 : vector<8x8xf32> to vector<1x8x8xf32>
    %35 = vector.extract_strided_slice %32 {offsets = [0, 0], sizes = [16, 8], strides = [1, 1]} : vector<16x96xbf16> to vector<16x8xbf16>
    %36 = vector.shape_cast %35 : vector<16x8xbf16> to vector<2x8x8xbf16>
    %37 = vector.extract_strided_slice %32 {offsets = [0, 32], sizes = [16, 8], strides = [1, 1]} : vector<16x96xbf16> to vector<16x8xbf16>
    %38 = vector.shape_cast %37 : vector<16x8xbf16> to vector<2x8x8xbf16>
    %39 = vector.extract_strided_slice %32 {offsets = [0, 64], sizes = [16, 8], strides = [1, 1]} : vector<16x96xbf16> to vector<16x8xbf16>
    %40 = vector.shape_cast %39 : vector<16x8xbf16> to vector<2x8x8xbf16>
    "tpu.trace_start"() <{level = 10 : i32, message = "bqd,bkd->bqk"}> : () -> ()
    %cst_24 = arith.constant dense<0.000000e+00> : vector<2x8x8xf32>
    %41 = tpu.matmul %36, %38, %cst_24 {dimension_numbers = #tpu.dot_dimension_numbers<[2], [2], [1], [1], [0, 0, 0, 1, 1, 1], [0], [0]>} : vector<2x8x8xbf16>, vector<2x8x8xbf16>, vector<2x8x8xf32> -> vector<2x8x8xf32>
    "tpu.trace_stop"() : () -> ()
    %42 = vector.broadcast %34 : vector<1x8x8xf32> to vector<2x8x8xf32>
    %43 = arith.addf %41, %42 : vector<2x8x8xf32>
    %cst_25 = arith.constant dense<0xFF800000> : vector<2x8xf32>
    %44 = vector.multi_reduction <maximumf>, %43, %cst_25 [2] : vector<2x8x8xf32> to vector<2x8xf32>
    %45 = vector.shape_cast %44 : vector<2x8xf32> to vector<2x8x1xf32>
    %46 = vector.broadcast %45 : vector<2x8x1xf32> to vector<2x8x8xf32>
    %47 = arith.subf %43, %46 : vector<2x8x8xf32>
    %48 = math.exp %47 : vector<2x8x8xf32>
    %cst_26 = arith.constant dense<0.000000e+00> : vector<2x8xf32>
    %49 = vector.multi_reduction <add>, %48, %cst_26 [2] : vector<2x8x8xf32> to vector<2x8xf32>
    %50 = vector.shape_cast %49 : vector<2x8xf32> to vector<2x8x1xf32>
    %51 = tpu.reciprocal %50 {approx = true} : vector<2x8x1xf32> -> vector<2x8x1xf32>
    %52 = vector.broadcast %51 : vector<2x8x1xf32> to vector<2x8x8xf32>
    %53 = arith.mulf %48, %52 : vector<2x8x8xf32>
    %54 = arith.truncf %53 : vector<2x8x8xf32> to vector<2x8x8xbf16>
    "tpu.trace_start"() <{level = 10 : i32, message = "bqk,bkd->bqd"}> : () -> ()
    %cst_27 = arith.constant dense<0.000000e+00> : vector<2x8x8xf32>
    %55 = tpu.matmul %54, %40, %cst_27 {dimension_numbers = #tpu.dot_dimension_numbers<[2], [1], [1], [2], [0, 0, 0, 1, 1, 2], [0], [0]>} : vector<2x8x8xbf16>, vector<2x8x8xbf16>, vector<2x8x8xf32> -> vector<2x8x8xf32>
    "tpu.trace_stop"() : () -> ()
    %56 = vector.shape_cast %55 : vector<2x8x8xf32> to vector<16x8xf32>
    %57 = vector.extract_strided_slice %32 {offsets = [0, 8], sizes = [16, 8], strides = [1, 1]} : vector<16x96xbf16> to vector<16x8xbf16>
    %58 = vector.shape_cast %57 : vector<16x8xbf16> to vector<2x8x8xbf16>
    %59 = vector.extract_strided_slice %32 {offsets = [0, 40], sizes = [16, 8], strides = [1, 1]} : vector<16x96xbf16> to vector<16x8xbf16>
    %60 = vector.shape_cast %59 : vector<16x8xbf16> to vector<2x8x8xbf16>
    %61 = vector.extract_strided_slice %32 {offsets = [0, 72], sizes = [16, 8], strides = [1, 1]} : vector<16x96xbf16> to vector<16x8xbf16>
    %62 = vector.shape_cast %61 : vector<16x8xbf16> to vector<2x8x8xbf16>
    "tpu.trace_start"() <{level = 10 : i32, message = "bqd,bkd->bqk"}> : () -> ()
    %cst_28 = arith.constant dense<0.000000e+00> : vector<2x8x8xf32>
    %63 = tpu.matmul %58, %60, %cst_28 {dimension_numbers = #tpu.dot_dimension_numbers<[2], [2], [1], [1], [0, 0, 0, 1, 1, 1], [0], [0]>} : vector<2x8x8xbf16>, vector<2x8x8xbf16>, vector<2x8x8xf32> -> vector<2x8x8xf32>
    "tpu.trace_stop"() : () -> ()
    %64 = vector.broadcast %34 : vector<1x8x8xf32> to vector<2x8x8xf32>
    %65 = arith.addf %63, %64 : vector<2x8x8xf32>
    %cst_29 = arith.constant dense<0xFF800000> : vector<2x8xf32>
    %66 = vector.multi_reduction <maximumf>, %65, %cst_29 [2] : vector<2x8x8xf32> to vector<2x8xf32>
    %67 = vector.shape_cast %66 : vector<2x8xf32> to vector<2x8x1xf32>
    %68 = vector.broadcast %67 : vector<2x8x1xf32> to vector<2x8x8xf32>
    %69 = arith.subf %65, %68 : vector<2x8x8xf32>
    %70 = math.exp %69 : vector<2x8x8xf32>
    %cst_30 = arith.constant dense<0.000000e+00> : vector<2x8xf32>
    %71 = vector.multi_reduction <add>, %70, %cst_30 [2] : vector<2x8x8xf32> to vector<2x8xf32>
    %72 = vector.shape_cast %71 : vector<2x8xf32> to vector<2x8x1xf32>
    %73 = tpu.reciprocal %72 {approx = true} : vector<2x8x1xf32> -> vector<2x8x1xf32>
    %74 = vector.broadcast %73 : vector<2x8x1xf32> to vector<2x8x8xf32>
    %75 = arith.mulf %70, %74 : vector<2x8x8xf32>
    %76 = arith.truncf %75 : vector<2x8x8xf32> to vector<2x8x8xbf16>
    "tpu.trace_start"() <{level = 10 : i32, message = "bqk,bkd->bqd"}> : () -> ()
    %cst_31 = arith.constant dense<0.000000e+00> : vector<2x8x8xf32>
    %77 = tpu.matmul %76, %62, %cst_31 {dimension_numbers = #tpu.dot_dimension_numbers<[2], [1], [1], [2], [0, 0, 0, 1, 1, 2], [0], [0]>} : vector<2x8x8xbf16>, vector<2x8x8xbf16>, vector<2x8x8xf32> -> vector<2x8x8xf32>
    "tpu.trace_stop"() : () -> ()
    %78 = vector.shape_cast %77 : vector<2x8x8xf32> to vector<16x8xf32>
    %79 = vector.extract_strided_slice %32 {offsets = [0, 16], sizes = [16, 8], strides = [1, 1]} : vector<16x96xbf16> to vector<16x8xbf16>
    %80 = vector.shape_cast %79 : vector<16x8xbf16> to vector<2x8x8xbf16>
    %81 = vector.extract_strided_slice %32 {offsets = [0, 48], sizes = [16, 8], strides = [1, 1]} : vector<16x96xbf16> to vector<16x8xbf16>
    %82 = vector.shape_cast %81 : vector<16x8xbf16> to vector<2x8x8xbf16>
    %83 = vector.extract_strided_slice %32 {offsets = [0, 80], sizes = [16, 8], strides = [1, 1]} : vector<16x96xbf16> to vector<16x8xbf16>
    %84 = vector.shape_cast %83 : vector<16x8xbf16> to vector<2x8x8xbf16>
    "tpu.trace_start"() <{level = 10 : i32, message = "bqd,bkd->bqk"}> : () -> ()
    %cst_32 = arith.constant dense<0.000000e+00> : vector<2x8x8xf32>
    %85 = tpu.matmul %80, %82, %cst_32 {dimension_numbers = #tpu.dot_dimension_numbers<[2], [2], [1], [1], [0, 0, 0, 1, 1, 1], [0], [0]>} : vector<2x8x8xbf16>, vector<2x8x8xbf16>, vector<2x8x8xf32> -> vector<2x8x8xf32>
    "tpu.trace_stop"() : () -> ()
    %86 = vector.broadcast %34 : vector<1x8x8xf32> to vector<2x8x8xf32>
    %87 = arith.addf %85, %86 : vector<2x8x8xf32>
    %cst_33 = arith.constant dense<0xFF800000> : vector<2x8xf32>
    %88 = vector.multi_reduction <maximumf>, %87, %cst_33 [2] : vector<2x8x8xf32> to vector<2x8xf32>
    %89 = vector.shape_cast %88 : vector<2x8xf32> to vector<2x8x1xf32>
    %90 = vector.broadcast %89 : vector<2x8x1xf32> to vector<2x8x8xf32>
    %91 = arith.subf %87, %90 : vector<2x8x8xf32>
    %92 = math.exp %91 : vector<2x8x8xf32>
    %cst_34 = arith.constant dense<0.000000e+00> : vector<2x8xf32>
    %93 = vector.multi_reduction <add>, %92, %cst_34 [2] : vector<2x8x8xf32> to vector<2x8xf32>
    %94 = vector.shape_cast %93 : vector<2x8xf32> to vector<2x8x1xf32>
    %95 = tpu.reciprocal %94 {approx = true} : vector<2x8x1xf32> -> vector<2x8x1xf32>
    %96 = vector.broadcast %95 : vector<2x8x1xf32> to vector<2x8x8xf32>
    %97 = arith.mulf %92, %96 : vector<2x8x8xf32>
    %98 = arith.truncf %97 : vector<2x8x8xf32> to vector<2x8x8xbf16>
    "tpu.trace_start"() <{level = 10 : i32, message = "bqk,bkd->bqd"}> : () -> ()
    %cst_35 = arith.constant dense<0.000000e+00> : vector<2x8x8xf32>
    %99 = tpu.matmul %98, %84, %cst_35 {dimension_numbers = #tpu.dot_dimension_numbers<[2], [1], [1], [2], [0, 0, 0, 1, 1, 2], [0], [0]>} : vector<2x8x8xbf16>, vector<2x8x8xbf16>, vector<2x8x8xf32> -> vector<2x8x8xf32>
    "tpu.trace_stop"() : () -> ()
    %100 = vector.shape_cast %99 : vector<2x8x8xf32> to vector<16x8xf32>
    %101 = vector.extract_strided_slice %32 {offsets = [0, 24], sizes = [16, 8], strides = [1, 1]} : vector<16x96xbf16> to vector<16x8xbf16>
    %102 = vector.shape_cast %101 : vector<16x8xbf16> to vector<2x8x8xbf16>
    %103 = vector.extract_strided_slice %32 {offsets = [0, 56], sizes = [16, 8], strides = [1, 1]} : vector<16x96xbf16> to vector<16x8xbf16>
    %104 = vector.shape_cast %103 : vector<16x8xbf16> to vector<2x8x8xbf16>
    %105 = vector.extract_strided_slice %32 {offsets = [0, 88], sizes = [16, 8], strides = [1, 1]} : vector<16x96xbf16> to vector<16x8xbf16>
    %106 = vector.shape_cast %105 : vector<16x8xbf16> to vector<2x8x8xbf16>
    "tpu.trace_start"() <{level = 10 : i32, message = "bqd,bkd->bqk"}> : () -> ()
    %cst_36 = arith.constant dense<0.000000e+00> : vector<2x8x8xf32>
    %107 = tpu.matmul %102, %104, %cst_36 {dimension_numbers = #tpu.dot_dimension_numbers<[2], [2], [1], [1], [0, 0, 0, 1, 1, 1], [0], [0]>} : vector<2x8x8xbf16>, vector<2x8x8xbf16>, vector<2x8x8xf32> -> vector<2x8x8xf32>
    "tpu.trace_stop"() : () -> ()
    %108 = vector.broadcast %34 : vector<1x8x8xf32> to vector<2x8x8xf32>
    %109 = arith.addf %107, %108 : vector<2x8x8xf32>
    %cst_37 = arith.constant dense<0xFF800000> : vector<2x8xf32>
    %110 = vector.multi_reduction <maximumf>, %109, %cst_37 [2] : vector<2x8x8xf32> to vector<2x8xf32>
    %111 = vector.shape_cast %110 : vector<2x8xf32> to vector<2x8x1xf32>
    %112 = vector.broadcast %111 : vector<2x8x1xf32> to vector<2x8x8xf32>
    %113 = arith.subf %109, %112 : vector<2x8x8xf32>
    %114 = math.exp %113 : vector<2x8x8xf32>
    %cst_38 = arith.constant dense<0.000000e+00> : vector<2x8xf32>
    %115 = vector.multi_reduction <add>, %114, %cst_38 [2] : vector<2x8x8xf32> to vector<2x8xf32>
    %116 = vector.shape_cast %115 : vector<2x8xf32> to vector<2x8x1xf32>
    %117 = tpu.reciprocal %116 {approx = true} : vector<2x8x1xf32> -> vector<2x8x1xf32>
    %118 = vector.broadcast %117 : vector<2x8x1xf32> to vector<2x8x8xf32>
    %119 = arith.mulf %114, %118 : vector<2x8x8xf32>
    %120 = arith.truncf %119 : vector<2x8x8xf32> to vector<2x8x8xbf16>
    "tpu.trace_start"() <{level = 10 : i32, message = "bqk,bkd->bqd"}> : () -> ()
    %cst_39 = arith.constant dense<0.000000e+00> : vector<2x8x8xf32>
    %121 = tpu.matmul %120, %106, %cst_39 {dimension_numbers = #tpu.dot_dimension_numbers<[2], [1], [1], [2], [0, 0, 0, 1, 1, 2], [0], [0]>} : vector<2x8x8xbf16>, vector<2x8x8xbf16>, vector<2x8x8xf32> -> vector<2x8x8xf32>
    "tpu.trace_stop"() : () -> ()
    %122 = vector.shape_cast %121 : vector<2x8x8xf32> to vector<16x8xf32>
    %123 = tpu.concatenate %56, %78, %100, %122 in 1 : vector<16x8xf32>, vector<16x8xf32>, vector<16x8xf32>, vector<16x8xf32> -> vector<16x32xf32>
    %124 = arith.addf %3, %123 : vector<16x32xf32>
    %cst_40 = arith.constant dense<0.000000e+00> : vector<16xf32>
    %125 = vector.multi_reduction <add>, %124, %cst_40 [1] : vector<16x32xf32> to vector<16xf32>
    %126 = vector.shape_cast %125 : vector<16xf32> to vector<16x1xf32>
    %cst_41 = arith.constant 3.200000e+01 : f32
    %127 = vector.broadcast %cst_41 : f32 to vector<16x1xf32>
    %128 = arith.divf %126, %127 : vector<16x1xf32>
    %129 = vector.broadcast %128 : vector<16x1xf32> to vector<16x32xf32>
    %130 = arith.subf %124, %129 : vector<16x32xf32>
    %131 = arith.mulf %130, %130 : vector<16x32xf32>
    %cst_42 = arith.constant dense<0.000000e+00> : vector<16xf32>
    %132 = vector.multi_reduction <add>, %131, %cst_42 [1] : vector<16x32xf32> to vector<16xf32>
    %133 = vector.shape_cast %132 : vector<16xf32> to vector<16x1xf32>
    %cst_43 = arith.constant 3.200000e+01 : f32
    %134 = vector.broadcast %cst_43 : f32 to vector<16x1xf32>
    %135 = arith.divf %133, %134 : vector<16x1xf32>
    %136 = vector.broadcast %128 : vector<16x1xf32> to vector<16x32xf32>
    %137 = arith.subf %124, %136 : vector<16x32xf32>
    %cst_44 = arith.constant 9.99999974E-6 : f32
    %138 = vector.broadcast %cst_44 : f32 to vector<16x1xf32>
    %139 = arith.addf %135, %138 : vector<16x1xf32>
    %140 = math.rsqrt %139 : vector<16x1xf32>
    %141 = vector.broadcast %140 : vector<16x1xf32> to vector<16x32xf32>
    %142 = arith.mulf %137, %141 : vector<16x32xf32>
    %143 = vector.broadcast %11 : vector<1x32xf32> to vector<16x32xf32>
    %144 = arith.mulf %142, %143 : vector<16x32xf32>
    %145 = vector.broadcast %13 : vector<1x32xf32> to vector<16x32xf32>
    %146 = arith.addf %144, %145 : vector<16x32xf32>
    %147 = arith.truncf %146 : vector<16x32xf32> to vector<16x32xbf16>
    %c0_45 = arith.constant 0 : index
    %c0_46 = arith.constant 0 : index
    %c0_47 = arith.constant 0 : index
    %148 = vector.load %arg5[%c0_45, %c0_46, %c0_47] : memref<1x32x64xbf16, #tpu.memory_space<vmem>>, vector<1x32x64xbf16>
    %149 = vector.shape_cast %148 : vector<1x32x64xbf16> to vector<32x64xbf16>
    %cst_48 = arith.constant dense<0.000000e+00> : vector<16x64xf32>
    %150 = tpu.matmul %147, %149, %cst_48 {dimension_numbers = #tpu.dot_dimension_numbers<[1], [0], [0], [1], [0, 0, 1, 1], [], []>} : vector<16x32xbf16>, vector<32x64xbf16>, vector<16x64xf32> -> vector<16x64xf32>
    %151 = vector.broadcast %7 : vector<1x64xf32> to vector<16x64xf32>
    %152 = arith.addf %150, %151 : vector<16x64xf32>
    %cst_49 = arith.constant 0.000000e+00 : f32
    %153 = vector.broadcast %cst_49 : f32 to vector<16x64xf32>
    %154 = arith.maximumf %152, %153 : vector<16x64xf32>
    %155 = arith.truncf %154 : vector<16x64xf32> to vector<16x64xbf16>
    %c0_50 = arith.constant 0 : index
    %c0_51 = arith.constant 0 : index
    %c0_52 = arith.constant 0 : index
    %156 = vector.load %arg6[%c0_50, %c0_51, %c0_52] : memref<1x64x32xbf16, #tpu.memory_space<vmem>>, vector<1x64x32xbf16>
    %157 = vector.shape_cast %156 : vector<1x64x32xbf16> to vector<64x32xbf16>
    %cst_53 = arith.constant dense<0.000000e+00> : vector<16x32xf32>
    %158 = tpu.matmul %155, %157, %cst_53 {dimension_numbers = #tpu.dot_dimension_numbers<[1], [0], [0], [1], [0, 0, 1, 1], [], []>} : vector<16x64xbf16>, vector<64x32xbf16>, vector<16x32xf32> -> vector<16x32xf32>
    %159 = vector.broadcast %9 : vector<1x32xf32> to vector<16x32xf32>
    %160 = arith.addf %158, %159 : vector<16x32xf32>
    %161 = arith.addf %146, %160 : vector<16x32xf32>
    %cst_54 = arith.constant dense<0.000000e+00> : vector<16xf32>
    %162 = vector.multi_reduction <add>, %161, %cst_54 [1] : vector<16x32xf32> to vector<16xf32>
    %163 = vector.shape_cast %162 : vector<16xf32> to vector<16x1xf32>
    %cst_55 = arith.constant 3.200000e+01 : f32
    %164 = vector.broadcast %cst_55 : f32 to vector<16x1xf32>
    %165 = arith.divf %163, %164 : vector<16x1xf32>
    %166 = vector.broadcast %165 : vector<16x1xf32> to vector<16x32xf32>
    %167 = arith.subf %161, %166 : vector<16x32xf32>
    %168 = arith.mulf %167, %167 : vector<16x32xf32>
    %cst_56 = arith.constant dense<0.000000e+00> : vector<16xf32>
    %169 = vector.multi_reduction <add>, %168, %cst_56 [1] : vector<16x32xf32> to vector<16xf32>
    %170 = vector.shape_cast %169 : vector<16xf32> to vector<16x1xf32>
    %cst_57 = arith.constant 3.200000e+01 : f32
    %171 = vector.broadcast %cst_57 : f32 to vector<16x1xf32>
    %172 = arith.divf %170, %171 : vector<16x1xf32>
    %173 = vector.broadcast %165 : vector<16x1xf32> to vector<16x32xf32>
    %174 = arith.subf %161, %173 : vector<16x32xf32>
    %cst_58 = arith.constant 9.99999974E-6 : f32
    %175 = vector.broadcast %cst_58 : f32 to vector<16x1xf32>
    %176 = arith.addf %172, %175 : vector<16x1xf32>
    %177 = math.rsqrt %176 : vector<16x1xf32>
    %178 = vector.broadcast %177 : vector<16x1xf32> to vector<16x32xf32>
    %179 = arith.mulf %174, %178 : vector<16x32xf32>
    %180 = vector.broadcast %15 : vector<1x32xf32> to vector<16x32xf32>
    %181 = arith.mulf %179, %180 : vector<16x32xf32>
    %182 = vector.broadcast %17 : vector<1x32xf32> to vector<16x32xf32>
    %183 = arith.addf %181, %182 : vector<16x32xf32>
    %c0_59 = arith.constant 0 : index
    %c0_60 = arith.constant 0 : index
    %184 = vector.load %arg8[%c0_59, %c0_60] : memref<16x32xf32, #tpu.memory_space<vmem>>, vector<16x32xf32>
    tpu.vector_store %arg8[%c0_59, %c0_60], %183 {strides = array<i32>} : memref<16x32xf32, #tpu.memory_space<vmem>>, vector<16x32xf32>,
    return
  }
  func.func @transform_0(%arg0: i32, %arg1: i32) -> (i32, i32) {
    %c0_i32 = arith.constant 0 : i32
    %c0_i32_0 = arith.constant 0 : i32
    return %arg0, %c0_i32 : i32, i32
  }
  func.func @transform_1(%arg0: i32, %arg1: i32) -> (i32, i32) {
    %c0_i32 = arith.constant 0 : i32
    %c0_i32_0 = arith.constant 0 : i32
    %c0_i32_1 = arith.constant 0 : i32
    return %c0_i32, %c0_i32_0 : i32, i32
  }
  func.func @transform_2(%arg0: i32, %arg1: i32) -> (i32, i32, i32) {
    %c0_i32 = arith.constant 0 : i32
    %c0_i32_0 = arith.constant 0 : i32
    %c0_i32_1 = arith.constant 0 : i32
    return %arg1, %c0_i32, %c0_i32_0 : i32, i32, i32
  }
  func.func @transform_3(%arg0: i32, %arg1: i32) -> (i32, i32, i32) {
    %c0_i32 = arith.constant 0 : i32
    %c0_i32_0 = arith.constant 0 : i32
    %c0_i32_1 = arith.constant 0 : i32
    return %arg1, %c0_i32, %c0_i32_0 : i32, i32, i32
  }
  func.func @transform_4(%arg0: i32, %arg1: i32) -> (i32, i32, i32) {
    %c0_i32 = arith.constant 0 : i32
    %c0_i32_0 = arith.constant 0 : i32
    %c0_i32_1 = arith.constant 0 : i32
    return %arg1, %c0_i32, %c0_i32_0 : i32, i32, i32
  }
  func.func @transform_5(%arg0: i32, %arg1: i32) -> (i32, i32, i32) {
    %c0_i32 = arith.constant 0 : i32
    %c0_i32_0 = arith.constant 0 : i32
    %c0_i32_1 = arith.constant 0 : i32
    return %arg1, %c0_i32, %c0_i32_0 : i32, i32, i32
  }
  func.func @transform_6(%arg0: i32, %arg1: i32) -> (i32, i32) {
    %c0_i32 = arith.constant 0 : i32
    %c0_i32_0 = arith.constant 0 : i32
    return %arg0, %c0_i32 : i32, i32
  }
}

</mosaic_0001>

<bundles_post_ra>
// kernel: tpu_custom_call.1
= control target key start
LH: loop header
LB: loop body
LE: loop exit
PB: predicated region body
PF: predicated region fallthrough
CT: control target
= control target key end

     0   :  { %11 = vsyncpa [#allocation3], 0  ;;  %s1773_s0 = inlined_call_operand.vmem [shape: f32[16,32], index: 0, kind: input, shape index: {}]   ;;  %s1774_s1 = inlined_call_operand.hbm [shape: f32[8,8], index: 1, kind: input, shape index: {}]   ;;  %s1775_s2 = inlined_call_operand.vmem [shape: bf16[2,32,96], index: 2, kind: input, shape index: {}]   ;;  %s1776_s3 = inlined_call_operand.vmem [shape: bf16[2,32,64], index: 3, kind: input, shape index: {}]   ;;  %s1777_s4 = inlined_call_operand.vmem [shape: bf16[2,64,32], index: 4, kind: input, shape index: {}]   ;;  %s1778_s5 = inlined_call_operand.vmem [shape: f32[2,8,128], index: 5, kind: input, shape index: {}]   ;;  %s1779_s6 = inlined_call_operand.hbm [shape: f32[16,32], index: 6, kind: output, shape index: {}]  }
   0x1   :  { %12 = vsyncpa [#allocation4], 0  ;;  %s1560_s21 = smov 0   ;;  %s1562_s22 = smov 0  }
   0x2   :  { %s1564_s23 = smov 0  }
   0x3 LB: > { %s1227_s24 = sadd.s32 4294967295, %s1504_s23   ;;  %s27_s25 = sadd.s32 1, %s1500_s22  ;;  %s1504_s23 = sphi %s1564_s23, %s18_s23   ;;  %s1500_s22 = sphi %s1562_s22, %s1781_s22   ;;  %s1496_s21 = sphi %s1560_s21, %s1780_s21  }
   0x4   : > { %p28_p0 = scmp.ge.s32.totalorder %s27_s25, 2  ;;  %p1228_p1 = scmp.ge.s32.totalorder %s1504_s23, 1 }
   0x5   : > { %p212_p2 = scmp.lt.s32.totalorder %s1504_s23, 3  ;;  %p1320_p4 = scmp.eq.s32.totalorder %s1227_s24, 0 }
   0x6   : > { %s1783_s25 = smov (%p28_p0, %s27_s25), 0  ;;  %s233_s28 = sshll.u32 %s1774_s1, 4  ;;  %s234_s28 = int_to_ptr.hbm [resolvable:$true] %s233_s28 }
   0x7   : > { %p213_p3 = pnand %p1228_p1, %p212_p2  ;;  %s1506_s29 = smov [#allocation2]  }
   0x8   : > { %s235_s30 = sshll.u32 %s1506_s29, 4  ;;  %s236_s30 = int_to_ptr.vmem [resolvable:$true] %s235_s30 }
   0x9   : > { %p1316_p5 = pneg %p213_p3  ;;  %279 = sbr.rel (%p213_p3) target bundleno = 1847 (0x737), region = 44 }
   0xb   : > { %p1317_p6 = pnand %p1320_p4, %p1316_p5 }
   0xd   : > { %1319 = dma.hbm_to_vmem [thread:$0]  (!%p1317_p6), %s234_s28, 128, %s236_s30, [#allocation3]  }
   0xe   : > { %1487 = dma.done.wait (%p1320_p4), [#allocation3], 128  }
   0xf   : > { %1489 = vsyncadd (%p1320_p4), [#allocation3], 4294967168  ;;  %p330_p7 = scmp.lt.s32.totalorder %s1496_s21, 1  ;;  %p1241_p8 = scmp.ne.s32.totalorder %s1496_s21, 0 }
  0x11   : > { %s331_s7 = scalar_select %p330_p7, %s1496_s21, 1 }
  0x12   : > { %354 = sbr.rel (%p1241_p8) target bundleno = 26 (0x1a), region = 52 }
  0x13   : > { %s1297_s8 = sshll.u32 %s331_s7, 4  ;;  %s1299_s9 = sshll.u32 %s331_s7, 5 }
  0x14   : > { %s334_s12 = scalar_lea.vmem %s1775_s2, %s1297_s8  ;;  %s1594_s15 = scalar_lea.vmem %s1776_s3, %s1297_s8 }
  0x15   : > { %s1599_s18 = scalar_lea.vmem %s1777_s4, %s1299_s9  ;;  %s1240_s19 = sshll.u32 %s331_s7, 3 }
  0x16   : > { %s1604_s27 = scalar_lea.vmem %s1778_s5, %s1240_s19 }
  0x17   : > { %v355_v0 = vld [vmem:[%s1773_s0] sm:$0xff]  ;;  %vm357_vm0 = vcmask 261120   ;;  %v356_v1 = vld [vmem:[%s1773_s0 + $0x8] sm:$0xff] }
  0x18   : > { %358 = vst.msk [vmem:[#allocation5] sm:$0xff] %vm357_vm0, %v355_v0 }
  0x19   : > { %359 = vst.msk [vmem:[#allocation5 + $0x8] sm:$0xff] %vm357_vm0, %v356_v1 }
  0x1a PF: > { %v1301_v2 = vld [vmem:[%s334_s12 + $0x8] sm:$0xff]  ;;  %v1300_v3 = vld [vmem:[%s334_s12] sm:$0xff]  ;;  %vm387_vm1 = vcmask 261120   ;;  %v405_v7 = vlaneseq  ;;  %v1507_v11 = vmov 1.0   ;;  %s1508_s21 = smov 120   ;;  %s1509_s7 = smov 88  }
  0x1b   : > { %397 = vmatpush.bf16.msra.mxu0 %v1301_v2  ;;  %v1367_v9 = vld [vmem:[%s1604_s27] ss:$0 sm:$0xff]  ;;  %s1510_s9 = smov 96   ;;  %s1511_s10 = smov 112   ;;  %vm419_vm3 = vcmask 64512   ;;  %vm492_vm4 = vcmask 1043456  }
  0x1c   : > { %v406_v8 = vand.u32 127, %v405_v7  ;;  %s1512_s11 = smov 80   ;;  %s1513_s12 = smov 72   ;;  %v413_v46 = vld [vmem:[#allocation2] sm:$0xff]  ;;  %vm895_vm5 = vcmask 195584   ;;  %vm892_vm6 = vcmask 130048  }
  0x1d   : > { %s1514_s13 = smov 104   ;;  %s1515_s14 = smov 64   ;;  %vm1028_vm14 = vcmask 523264  }
  0x1e   : > { %vm407_vm2 = vcmp.lt.s32.totalorder %v406_v8, 32  ;;  %s1516_s16 = smov 56   ;;  %s1517_s17 = smov 48  }
  0x1f   : > { %v1613_v4 = vld [vmem:[#allocation5] sm:$0xff]  ;;  %398 = vmatpush.bf16.msra.mxu0 %v1300_v3  ;;  %v408_v12 = vsel %vm407_vm2, 0.35355338, %v1507_v11  ;;  %s1518_s19 = smov 40   ;;  %s1519_s20 = smov 8  }
  0x20   : > { %v1615_v5 = vld [vmem:[#allocation5 + $0x8] sm:$0xff]  ;;  %s1520_s26 = smov 16   ;;  %s1521_s28 = smov 24  }
  0x21   : > { %v369_v6 = vpack.c.bf16 %v1615_v5, %v1613_v4  ;;  %p1322_p9 = scmp.eq.s32.totalorder %s1227_s24, 1  ;;  %s1524_s8 = smov 128  }
  0x23   : > { %1250 = vmatmul.msk.bf16.vlgmr.msra.gmra.mxu0 %vm387_vm1, %v369_v6 }
  0xa0   : > { %v400_v10 = vpop.f32.mrf.mxu0 }
  0xa1   : > { %v401_v13 = vadd.f32 %v1367_v9, %v400_v10 }
  0xa3   : > { %v409_v14 = vmul.f32 %v408_v12, %v401_v13 }
  0xa5   : > { %v411_v15 = vpack.c.bf16 %v409_v14, %v409_v14 }
  0xa7   : > { %v415_v16 = vunpack.c.l.b16 %v411_v15 }
  0xa8   : > { %v402_v17 = vpop.f32.mrf.mxu0 }
  0xa9   : > { %v1621_v18 = vpack.c.b16 %v415_v16, %v415_v16  ;;  %v403_v19 = vadd.f32 %v1367_v9, %v402_v17 }
  0xab   : > { %v410_v20 = vmul.f32 %v408_v12, %v403_v19  ;;  %530 = vrot.lane.b32.xlu2 %v1621_v18, %s1508_s21  ;;  %532 = vrot.lane.b32.xlu1 %v1621_v18, %s1509_s7 }
  0xac   : > { %417 = vrot.lane.b32.xlu0 %v1621_v18, %s1510_s9 }
  0xad   : > { %v412_v21 = vpack.c.bf16 %v410_v20, %v410_v20 }
  0xaf   : > { %v440_v22 = vunpack.c.l.b16 %v412_v21 }
  0xb1   : > { %v1626_v23 = vpack.c.b16 %v440_v22, %v440_v22 }
  0xb3   : > { %553 = vrot.lane.b32.xlu2 %v1626_v23, %s1508_s21  ;;  %555 = vrot.lane.b32.xlu1 %v1626_v23, %s1509_s7 }
  0xb4   : > { %442 = vrot.lane.b32.xlu0 %v1626_v23, %s1510_s9 }
  0xbb   : > { %642 = vrot.lane.b32.xlu2 %v1621_v18, %s1511_s10  ;;  %667 = vrot.lane.b32.xlu1 %v1626_v23, %s1512_s11 }
  0xbc   : > { %644 = vrot.lane.b32.xlu0 %v1621_v18, %s1512_s11 }
  0xc3   : > { %779 = vrot.lane.b32.xlu2 %v1626_v23, %s1513_s12  ;;  %756 = vrot.lane.b32.xlu1 %v1621_v18, %s1513_s12 }
  0xc4   : > { %665 = vrot.lane.b32.xlu0 %v1626_v23, %s1511_s10 }
  0xcb   : > { %777 = vrot.lane.b32.xlu1 %v1626_v23, %s1514_s13 }
  0xcc   : > { %754 = vrot.lane.b32.xlu0 %v1621_v18, %s1514_s13 }
 0x105   : > { %v531_v24 = vpop.permute.xlu2 %530 }
 0x10d   : > { %v554_v29 = vpop.permute.xlu2 %553 }
 0x115   : > { %v643_v34 = vpop.permute.xlu2 %642 }
 0x11d   : > { %v533_v25 = vpop.permute.xlu1 %532  ;;  %v780_v39 = vpop.permute.xlu2 %779 }
 0x11e   : > { %v418_v26 = vpop.permute.xlu0 %417  ;;  %v538_v27 = vsel %vm419_vm3, %v533_v25, 0  ;;  %v785_v42 = vsel %vm419_vm3, %v780_v39, 0 }
 0x11f   : > { %v424_v28 = vsel %vm419_vm3, %v418_v26, 0  ;;  %547 = vmatpush.bf16.xpose.msrb.mxu0 %v538_v27 }
 0x120   : > { %433 = vmatpush.bf16.xpose.msra.mxu1 %v424_v28 }
 0x125   : > { %v556_v30 = vpop.permute.xlu1 %555 }
 0x126   : > { %v443_v31 = vpop.permute.xlu0 %442  ;;  %1255 = vmatmul.msk.bf16.vlgmr.msrb.gmra.mxu0 %vm419_vm3, %v531_v24  ;;  %v561_v32 = vsel %vm419_vm3, %v556_v30, 0 }
 0x127   : > { %1251 = vmatmul.msk.bf16.vlgmr.msra.gmra.mxu1 %vm419_vm3, %v411_v15  ;;  %v448_v33 = vsel %vm419_vm3, %v443_v31, 0 }
 0x128   : > { %457 = vmatpush.bf16.xpose.msra.mxu2 %v448_v33  ;;  %570 = vmatpush.bf16.xpose.msrb.mxu1 %v561_v32 }
 0x12d   : > { %v668_v35 = vpop.permute.xlu1 %667 }
 0x12e   : > { %v673_v36 = vsel %vm419_vm3, %v668_v35, 0  ;;  %v645_v37 = vpop.permute.xlu0 %644 }
 0x12f   : > { %v650_v38 = vsel %vm419_vm3, %v645_v37, 0  ;;  %1252 = vmatmul.msk.bf16.vlgmr.msra.gmra.mxu2 %vm419_vm3, %v412_v21 }
 0x130   : > { %682 = vmatpush.bf16.xpose.msra.mxu1 %v673_v36  ;;  %659 = vmatpush.bf16.xpose.msra.mxu0 %v650_v38 }
 0x135   : > { %v757_v40 = vpop.permute.xlu1 %756 }
 0x136   : > { %v762_v41 = vsel %vm419_vm3, %v757_v40, 0  ;;  %v666_v43 = vpop.permute.xlu0 %665 }
 0x137   : > { %1256 = vmatmul.msk.bf16.vlgmr.msrb.gmra.mxu1 %vm419_vm3, %v554_v29  ;;  %1259 = vmatmul.msk.bf16.vlgmr.msra.gmra.mxu0 %vm419_vm3, %v643_v34 }
 0x138   : > { %794 = vmatpush.bf16.xpose.msrb.mxu1 %v785_v42  ;;  %771 = vmatpush.bf16.xpose.msrb.mxu0 %v762_v41 }
 0x13d   : > { %v778_v45 = vpop.permute.xlu1 %777 }
 0x13e   : > { %v755_v44 = vpop.permute.xlu0 %754 }
 0x147   : > { %1260 = vmatmul.msk.bf16.vlgmr.msra.gmra.mxu1 %vm419_vm3, %v666_v43  ;;  %1263 = vmatmul.msk.bf16.vlgmr.msrb.gmra.mxu0 %vm419_vm3, %v755_v44 }
 0x157   : > { %1264 = vmatmul.msk.bf16.vlgmr.msrb.gmra.mxu1 %vm419_vm3, %v778_v45 }
 0x1a3   : > { %v549_v47 = vpop.f32.mrf.mxu0 }
 0x1a4   : > { %v435_v48 = vpop.f32.mrf.mxu1  ;;  %v550_v49 = vadd.f32 %v549_v47, %v413_v46 }
 0x1a5   : > { %v436_v50 = vadd.f32 %v435_v48, %v413_v46 }
 0x1a6   : > { %v576_v51 = vsel %vm419_vm3, %v550_v49, -inf }
 0x1a7   : > { %577 = vmax.xlane.f32.xlu1 %v576_v51  ;;  %v463_v52 = vsel %vm419_vm3, %v436_v50, -inf }
 0x1a8   : > { %464 = vmax.xlane.f32.xlu2 %v463_v52 }
 0x1ab   : > { %v551_v53 = vpop.f32.mrf.mxu0 }
 0x1ac   : > { %v437_v54 = vpop.f32.mrf.mxu1 }
 0x1b2   : > { %v459_v55 = vpop.f32.mrf.mxu2 }
 0x1b3   : > { %v460_v56 = vadd.f32 %v459_v55, %v413_v46 }
 0x1b4   : > { %v572_v57 = vpop.f32.mrf.mxu1  ;;  %v661_v58 = vpop.f32.mrf.mxu0 }
 0x1b5   : > { %v573_v59 = vadd.f32 %v572_v57, %v413_v46  ;;  %v1657_v60 = vadd.f32 %v661_v58, %v413_v46  ;;  %v466_v61 = vsel %vm419_vm3, %v460_v56, -inf }
 0x1b6   : > { %467 = vmax.xlane.f32.xlu0 %v466_v61 }
 0x1b7   : > { %v579_v62 = vsel %vm419_vm3, %v573_v59, -inf  ;;  %v688_v15 = vsel %vm419_vm3, %v1657_v60, -inf }
 0x1b8   : > { %580 = vmax.xlane.f32.xlu2 %v579_v62 }
 0x1ba   : > { %v461_v63 = vpop.f32.mrf.mxu2 }
 0x1bc   : > { %v574_v0 = vpop.f32.mrf.mxu1  ;;  %v663_v1 = vpop.f32.mrf.mxu0 }
 0x1c0   : > { %509 = vrot.lane.b32.xlu1 %v1626_v23, %s1515_s14 }
 0x1c4   : > { %v684_v2 = vpop.f32.mrf.mxu1  ;;  %v773_v3 = vpop.f32.mrf.mxu0 }
 0x1c5   : > { %v685_v11 = vadd.f32 %v684_v2, %v413_v46  ;;  %v774_v14 = vadd.f32 %v773_v3, %v413_v46 }
 0x1c7   : > { %v691_v13 = vsel %vm419_vm3, %v685_v11, -inf  ;;  %v800_v16 = vsel %vm419_vm3, %v774_v14, -inf }
 0x1c8   : > { %621 = vrot.lane.b32.xlu1 %v1626_v23, %s1516_s16 }
 0x1ca   : > { %600 = vrot.lane.b32.xlu0 %v1621_v18, %s1516_s16 }
 0x1cc   : > { %v686_v6 = vpop.f32.mrf.mxu1  ;;  %v775_v7 = vpop.f32.mrf.mxu0 }
 0x1d0   : > { %487 = vrot.lane.b32.xlu2 %v1621_v18, %s1515_s14 }
 0x1d4   : > { %v796_v8 = vpop.f32.mrf.mxu1 }
 0x1d5   : > { %v797_v10 = vadd.f32 %v796_v8, %v413_v46 }
 0x1d7   : > { %v803_v12 = vsel %vm419_vm3, %v797_v10, -inf }
 0x1dc   : > { %v798_v9 = vpop.f32.mrf.mxu1 }
 0x1f2   : > { %804 = vmax.xlane.f32.xlu1 %v803_v12 }
 0x1f4   : > { %692 = vmax.xlane.f32.xlu0 %v691_v13 }
 0x1f9   : > { %689 = vmax.xlane.f32.xlu2 %v688_v15 }
 0x1fc   : > { %801 = vmax.xlane.f32.xlu0 %v800_v16 }
 0x21a   : > { %v578_v17 = vpop.xlane.xlu1 %577 }
 0x21b   : > { %v582_v19 = vsub.f32 %v550_v49, %v578_v17  ;;  %v465_v20 = vpop.xlane.xlu2 %464 }
 0x21c   : > { %v469_v21 = vsub.f32 %v436_v50, %v465_v20 }
 0x21d   : > { %v584_v22 = vmul.f32 1.442695, %v582_v19 }
 0x21e   : > { %v471_v24 = vmul.f32 1.442695, %v469_v21 }
 0x21f   : > { %1374 = vpow2.f32 %v584_v22 }
 0x220   : > { %1376 = vpow2.f32 %v471_v24 }
 0x225   : > { %v1670_v25 = vpop.eup %1374 }
 0x226   : > { %v1672_v26 = vpop.eup %1376  ;;  %v588_v27 = vsel %vm419_vm3, %v1670_v25, 0.0 }
 0x227   : > { %v475_v28 = vsel %vm419_vm3, %v1672_v26, 0.0  ;;  %589 = vadd.xlane.f32.xlu0 %v588_v27 }
 0x228   : > { %476 = vadd.xlane.f32.xlu1 %v475_v28 }
 0x229   : > { %v468_v29 = vpop.xlane.xlu0 %467 }
 0x22a   : > { %v470_v30 = vsub.f32 %v460_v56, %v468_v29 }
 0x22b   : > { %v581_v31 = vpop.xlane.xlu2 %580 }
 0x22c   : > { %v473_v32 = vmul.f32 1.442695, %v470_v30  ;;  %v583_v33 = vsub.f32 %v573_v59, %v581_v31 }
 0x22e   : > { %1378 = vpow2.f32 %v473_v32  ;;  %v586_v34 = vmul.f32 1.442695, %v583_v33 }
 0x230   : > { %1380 = vpow2.f32 %v586_v34 }
 0x232   : > { %v510_v35 = vpop.permute.xlu1 %509 }
 0x233   : > { %v488_v36 = vpop.permute.xlu2 %487  ;;  %v515_v37 = vsel %vm492_vm4, %v510_v35, 0 }
 0x234   : > { %v1679_v38 = vpop.eup %1378  ;;  %v494_v39 = vsel %vm492_vm4, %v488_v36, 0 }
 0x235   : > { %503 = vmatpush.bf16.msra.mxu3 %v494_v39  ;;  %v478_v40 = vsel %vm419_vm3, %v1679_v38, 0.0 }
 0x236   : > { %v1684_v41 = vpop.eup %1380  ;;  %479 = vadd.xlane.f32.xlu0 %v478_v40 }
 0x237   : > { %v591_v42 = vsel %vm419_vm3, %v1684_v41, 0.0 }
 0x238   : > { %592 = vadd.xlane.f32.xlu2 %v591_v42 }
 0x239   : > { %524 = vmatpush.bf16.msrb.mxu3 %v515_v37 }
 0x23a   : > { %v622_v45 = vpop.permute.xlu1 %621 }
 0x23b   : > { %v627_v12 = vsel %vm492_vm4, %v622_v45, 0 }
 0x23c   : > { %v601_v43 = vpop.permute.xlu0 %600 }
 0x23d   : > { %v606_v44 = vsel %vm492_vm4, %v601_v43, 0 }
 0x23e   : > { %615 = vmatpush.bf16.msrb.mxu2 %v606_v44 }
 0x241   : > { %733 = vrot.lane.b32.xlu1 %v1626_v23, %s1517_s17 }
 0x250   : > { %712 = vrot.lane.b32.xlu2 %v1621_v18, %s1517_s17 }
 0x265   : > { %v805_v46 = vpop.xlane.xlu1 %804 }
 0x266   : > { %v807_v47 = vsub.f32 %v797_v10, %v805_v46 }
 0x267   : > { %v693_v48 = vpop.xlane.xlu0 %692 }
 0x268   : > { %v695_v49 = vsub.f32 %v685_v11, %v693_v48  ;;  %v810_v51 = vmul.f32 1.442695, %v807_v47 }
 0x26a   : > { %v698_v50 = vmul.f32 1.442695, %v695_v49 }
 0x26c   : > { %1382 = vpow2.f32 %v698_v50  ;;  %v690_v52 = vpop.xlane.xlu2 %689 }
 0x26d   : > { %v694_v53 = vsub.f32 %v1657_v60, %v690_v52  ;;  %1384 = vpow2.f32 %v810_v51 }
 0x26f   : > { %v696_v54 = vmul.f32 1.442695, %v694_v53  ;;  %v802_v55 = vpop.xlane.xlu0 %801 }
 0x270   : > { %v806_v56 = vsub.f32 %v774_v14, %v802_v55 }
 0x271   : > { %1386 = vpow2.f32 %v696_v54 }
 0x272   : > { %v1383_v57 = vpop.eup %1382  ;;  %v808_v58 = vmul.f32 1.442695, %v806_v56 }
 0x273   : > { %v703_v59 = vsel %vm419_vm3, %v1383_v57, 0.0  ;;  %v1693_v61 = vpop.eup %1384 }
 0x274   : > { %1388 = vpow2.f32 %v808_v58  ;;  %704 = vadd.xlane.f32.xlu0 %v703_v59  ;;  %v815_v0 = vsel %vm419_vm3, %v1693_v61, 0.0 }
 0x277   : > { %v1387_v62 = vpop.eup %1386 }
 0x278   : > { %v700_v63 = vsel %vm419_vm3, %v1387_v62, 0.0 }
 0x279   : > { %701 = vadd.xlane.f32.xlu1 %v700_v63  ;;  %816 = vadd.xlane.f32.xlu2 %v815_v0 }
 0x27a   : > { %v1389_v60 = vpop.eup %1388 }
 0x27b   : > { %v812_v1 = vsel %vm419_vm3, %v1389_v60, 0.0 }
 0x27c   : > { %813 = vadd.xlane.f32.xlu0 %v812_v1 }
 0x290   : > { %824 = vrot.lane.b32.xlu0 %v1621_v18, %s1518_s19 }
 0x292   : > { %845 = vrot.lane.b32.xlu1 %v1626_v23, %s1518_s19 }
 0x29a   : > { %v590_v2 = vpop.xlane.xlu0 %589 }
 0x29b   : > { %v477_v3 = vpop.xlane.xlu1 %476  ;;  %1390 = vrcp.f32 %v590_v2 }
 0x29c   : > { %1392 = vrcp.f32 %v477_v3 }
 0x2a1   : > { %v1391_v6 = vpop.eup %1390 }
 0x2a2   : > { %v1393_v7 = vpop.eup %1392  ;;  %v596_v8 = vmul.f32 %v1391_v6, %v1670_v25 }
 0x2a3   : > { %v483_v9 = vmul.f32 %v1393_v7, %v1672_v26 }
 0x2a4   : > { %v598_v10 = vpack.c.bf16 %v596_v8, %v596_v8 }
 0x2a5   : > { %v485_v11 = vpack.c.bf16 %v483_v9, %v483_v9 }
 0x2a6   : > { %1257 = vmatmul.msk.bf16.vlgmr.msrb.gmra.mxu2 %vm419_vm3, %v598_v10 }
 0x2a7   : > { %1253 = vmatmul.msk.bf16.vlgmr.msra.gmra.mxu3 %vm419_vm3, %v485_v11 }
 0x2a8   : > { %636 = vmatpush.bf16.msra.mxu3 %v627_v12 }
 0x2a9   : > { %v480_v18 = vpop.xlane.xlu0 %479 }
 0x2aa   : > { %1394 = vrcp.f32 %v480_v18 }
 0x2ab   : > { %v593_v23 = vpop.xlane.xlu2 %592 }
 0x2ac   : > { %1396 = vrcp.f32 %v593_v23 }
 0x2b0   : > { %v1395_v13 = vpop.eup %1394 }
 0x2b1   : > { %v484_v14 = vmul.f32 %v1395_v13, %v1679_v38  ;;  %v1522_v13 = vmov 32.0  }
 0x2b2   : > { %v1397_v21 = vpop.eup %1396 }
 0x2b3   : > { %v713_v15 = vpop.permute.xlu2 %712  ;;  %v734_v17 = vpop.permute.xlu1 %733  ;;  %v486_v19 = vpack.c.bf16 %v484_v14, %v484_v14  ;;  %v597_v22 = vmul.f32 %v1397_v21, %v1684_v41 }
 0x2b4   : > { %v718_v16 = vsel %vm492_vm4, %v713_v15, 0  ;;  %v739_v20 = vsel %vm492_vm4, %v734_v17, 0 }
 0x2b5   : > { %727 = vmatpush.bf16.msra.mxu2 %v718_v16  ;;  %v599_v24 = vpack.c.bf16 %v597_v22, %v597_v22 }
 0x2b7   : > { %1254 = vmatmul.msk.bf16.vlgmr.msrb.gmra.mxu3 %vm419_vm3, %v486_v19 }
 0x2b8   : > { %748 = vmatpush.bf16.msrb.mxu3 %v739_v20 }
 0x2c7   : > { %1258 = vmatmul.msk.bf16.vlgmr.msra.gmra.mxu3 %vm419_vm3, %v599_v24 }
 0x2e7   : > { %v705_v25 = vpop.xlane.xlu0 %704 }
 0x2e8   : > { %1398 = vrcp.f32 %v705_v25 }
 0x2ec   : > { %v702_v26 = vpop.xlane.xlu1 %701  ;;  %v817_v32 = vpop.xlane.xlu2 %816 }
 0x2ed   : > { %1400 = vrcp.f32 %v702_v26 }
 0x2ee   : > { %v1399_v27 = vpop.eup %1398  ;;  %1402 = vrcp.f32 %v817_v32 }
 0x2ef   : > { %v709_v28 = vmul.f32 %v1399_v27, %v1383_v57  ;;  %v814_v34 = vpop.xlane.xlu0 %813 }
 0x2f0   : > { %1404 = vrcp.f32 %v814_v34  ;;  %v1302_v34 = vld [vmem:[%s1594_s15] sm:$0xff] }
 0x2f1   : > { %v711_v29 = vpack.c.bf16 %v709_v28, %v709_v28  ;;  %1406 = vrcp.f32 %v1522_v13 }
 0x2f3   : > { %1262 = vmatmul.msk.bf16.vlgmr.msrb.gmra.mxu3 %vm419_vm3, %v711_v29  ;;  %v1401_v30 = vpop.eup %1400 }
 0x2f4   : > { %v708_v31 = vmul.f32 %v1401_v30, %v1387_v62  ;;  %v1403_v35 = vpop.eup %1402 }
 0x2f5   : > { %v821_v38 = vmul.f32 %v1403_v35, %v1693_v61 }
 0x2f6   : > { %v710_v33 = vpack.c.bf16 %v708_v31, %v708_v31  ;;  %v1405_v36 = vpop.eup %1404 }
 0x2f7   : > { %v820_v39 = vmul.f32 %v1405_v36, %v1389_v60  ;;  %v823_v43 = vpack.c.bf16 %v821_v38, %v821_v38  ;;  %v1407_v14 = vpop.eup %1406 }
 0x2f8   : > { %1261 = vmatmul.msk.bf16.vlgmr.msra.gmra.mxu2 %vm419_vm3, %v710_v33  ;;  %v907_v15 = vmul.f32 32.0, %v1407_v14  ;;  %vm911_vm7 = vweird.f32 %v1407_v14  ;;  %v1303_v33 = vld [vmem:[%s1594_s15 + $0x8] sm:$0xff]  ;;  %s1523_s15 = smov [#allocation5]  }
 0x2f9   : > { %v822_v44 = vpack.c.bf16 %v820_v39, %v820_v39  ;;  %984 = vmatpush.bf16.msra.mxu0 %v1303_v33 }
 0x2fd   : > { %985 = vmatpush.bf16.msra.mxu0 %v1302_v34 }
 0x302   : > { %v825_v37 = vpop.permute.xlu0 %824 }
 0x303   : > { %v830_v40 = vsel %vm492_vm4, %v825_v37, 0 }
 0x304   : > { %v846_v41 = vpop.permute.xlu1 %845  ;;  %839 = vmatpush.bf16.msrb.mxu2 %v830_v40 }
 0x305   : > { %v851_v42 = vsel %vm492_vm4, %v846_v41, 0 }
 0x306   : > { %860 = vmatpush.bf16.msra.mxu3 %v851_v42 }
 0x308   : > { %1265 = vmatmul.msk.bf16.vlgmr.msrb.gmra.mxu2 %vm419_vm3, %v822_v44 }
 0x309   : > { %1266 = vmatmul.msk.bf16.vlgmr.msra.gmra.mxu3 %vm419_vm3, %v823_v43 }
 0x329   : > { %v617_v45 = vpop.f32.mrf.mxu2 }
 0x32a   : > { %v505_v46 = vpop.f32.mrf.mxu3  ;;  %868 = vrot.lane.b32.xlu0 %v617_v45, %s1519_s20 }
 0x331   : > { %v619_v47 = vpop.f32.mrf.mxu2 }
 0x332   : > { %v507_v48 = vpop.f32.mrf.mxu3 }
 0x33a   : > { %v526_v49 = vpop.f32.mrf.mxu3 }
 0x342   : > { %v528_v50 = vpop.f32.mrf.mxu3 }
 0x343   : > { %v1368_v50 = vld [vmem:[%s1604_s27 + $0x3] ss:$0 sm:$0xff] }
 0x34a   : > { %v638_v51 = vpop.f32.mrf.mxu3 }
 0x34b   : > { %870 = vrot.lane.b32.xlu1 %v638_v51, %s1519_s20 }
 0x352   : > { %v640_v52 = vpop.f32.mrf.mxu3 }
 0x376   : > { %v750_v53 = vpop.f32.mrf.mxu3 }
 0x377   : > { %878 = vrot.lane.b32.xlu1 %v750_v53, %s1520_s26 }
 0x37b   : > { %v729_v54 = vpop.f32.mrf.mxu2 }
 0x37c   : > { %876 = vrot.lane.b32.xlu0 %v729_v54, %s1520_s26  ;;  %v1369_v54 = vld [vmem:[%s1604_s27 + $0x4] ss:$0 sm:$0xff] }
 0x37e   : > { %v752_v55 = vpop.f32.mrf.mxu3 }
 0x383   : > { %v731_v56 = vpop.f32.mrf.mxu2 }
 0x38b   : > { %v841_v57 = vpop.f32.mrf.mxu2 }
 0x38c   : > { %v862_v58 = vpop.f32.mrf.mxu3  ;;  %884 = vrot.lane.b32.xlu2 %v841_v57, %s1521_s28 }
 0x38d   : > { %886 = vrot.lane.b32.xlu0 %v862_v58, %s1521_s28 }
 0x393   : > { %v843_v59 = vpop.f32.mrf.mxu2 }
 0x394   : > { %v864_v61 = vpop.f32.mrf.mxu3 }
 0x39c   : > { %v869_v62 = vpop.permute.xlu0 %868 }
 0x39d   : > { %v890_v63 = vsel %vm419_vm3, %v505_v46, %v869_v62  ;;  %v1307_v62 = vld [vmem:[%s1599_s18 + $0x18] sm:$0xff] }
 0x39e   : > { %1036 = vmatpush.bf16.msra.mxu1 %v1307_v62 }
 0x3bd   : > { %v871_v6 = vpop.permute.xlu1 %870 }
 0x3be   : > { %v891_v9 = vsel %vm419_vm3, %v526_v49, %v871_v6 }
 0x3e6   : > { %v885_v60 = vpop.permute.xlu2 %884 }
 0x3e9   : > { %v879_v8 = vpop.permute.xlu1 %878 }
 0x3ea   : > { %v894_v10 = vsel %vm892_vm6, %v891_v9, %v879_v8 }
 0x3ee   : > { %v877_v0 = vpop.permute.xlu0 %876 }
 0x3ef   : > { %v893_v1 = vsel %vm892_vm6, %v890_v63, %v877_v0  ;;  %v1306_v63 = vld [vmem:[%s1599_s18 + $0x10] sm:$0xff]  ;;  %v1305_v0 = vld [vmem:[%s1599_s18 + $0x8] sm:$0xff] }
 0x3f0   : > { %v896_v2 = vsel %vm895_vm5, %v893_v1, %v885_v60  ;;  %1037 = vmatpush.bf16.msra.mxu1 %v1306_v63  ;;  %v1304_v60 = vld [vmem:[%s1599_s18] sm:$0xff]  ;;  %s1108_s18 = sshll.u32 %s1523_s15, 4  ;;  %s1109_s18 = int_to_ptr.vmem [resolvable:$true] %s1108_s18 }
 0x3f1   : > { %v898_v3 = vadd.f32 %v896_v2, %v1613_v4  ;;  %v908_v4 = vsub.f32 1.0, %v907_v15  ;;  %v1370_v2 = vld [vmem:[%s1604_s27 + $0x1] ss:$0 sm:$0xff] }
 0x3f3   : > { %v900_v7 = vsel %vm387_vm1, %v898_v3, 0.0  ;;  %v909_v16 = vmul.f32 %v1407_v14, %v908_v4 }
 0x3f4   : > { %901 = vadd.xlane.f32.xlu1 %v900_v7  ;;  %1038 = vmatpush.bf16.msra.mxu1 %v1305_v0 }
 0x3f5   : > { %v910_v17 = vadd.f32 %v1407_v14, %v909_v16 }
 0x3f7   : > { %v1727_v19 = vsel %vm911_vm7, %v1407_v14, %v910_v17 }
 0x3f8   : > { %1039 = vmatpush.bf16.msra.mxu1 %v1304_v60 }
 0x3ff   : > { %v887_v11 = vpop.permute.xlu0 %886 }
 0x400   : > { %v897_v12 = vsel %vm895_vm5, %v894_v10, %v887_v11  ;;  %v1371_v11 = vld [vmem:[%s1604_s27 + $0x2] ss:$0 sm:$0xff] }
 0x401   : > { %v899_v18 = vadd.f32 %v897_v12, %v1615_v5 }
 0x403   : > { %v903_v23 = vsel %vm387_vm1, %v899_v18, 0.0 }
 0x404   : > { %904 = vadd.xlane.f32.xlu0 %v903_v23 }
 0x467   : > { %v902_v20 = vpop.xlane.xlu1 %901 }
 0x468   : > { %v913_v21 = vmul.f32 %v1727_v19, %v902_v20 }
 0x46a   : > { %v915_v22 = vsub.f32 %v898_v3, %v913_v21 }
 0x46c   : > { %v917_v5 = vmul.f32 %v915_v22, %v915_v22 }
 0x46e   : > { %v919_v24 = vsel %vm387_vm1, %v917_v5, 0.0 }
 0x46f   : > { %920 = vadd.xlane.f32.xlu2 %v919_v24 }
 0x477   : > { %v905_v25 = vpop.xlane.xlu0 %904 }
 0x478   : > { %v914_v26 = vmul.f32 %v1727_v19, %v905_v25 }
 0x47a   : > { %v916_v27 = vsub.f32 %v899_v18, %v914_v26 }
 0x47c   : > { %v918_v28 = vmul.f32 %v916_v27, %v916_v27 }
 0x47e   : > { %v922_v29 = vsel %vm387_vm1, %v918_v28, 0.0 }
 0x47f   : > { %923 = vadd.xlane.f32.xlu1 %v922_v29 }
 0x4e2   : > { %v921_v30 = vpop.xlane.xlu2 %920 }
 0x4e3   : > { %v925_v31 = vmul.f32 %v921_v30, %v1727_v19 }
 0x4e5   : > { %v927_v32 = vadd.f32 1e-05, %v925_v31 }
 0x4e7   : > { %1408 = vrsqrt.f32 %v927_v32  ;;  %vm935_vm9 = vweird.f32 %v927_v32 }
 0x4ed   : > { %v1409_v35 = vpop.eup %1408 }
 0x4ee   : > { %v930_v36 = vmul.f32 %v1409_v35, %v927_v32  ;;  %vm936_vm8 = vweird.f32 %v1409_v35 }
 0x4ef   : > { %vm937_vm10 = vmor %vm935_vm9, %vm936_vm8 }
 0x4f0   : > { %v931_v37 = vmul.f32 %v1409_v35, %v930_v36 }
 0x4f2   : > { %v924_v38 = vpop.xlane.xlu1 %923  ;;  %v932_v41 = vmul.f32 0.5, %v931_v37 }
 0x4f3   : > { %v926_v39 = vmul.f32 %v924_v38, %v1727_v19 }
 0x4f4   : > { %v933_v42 = vsub.f32 1.5, %v932_v41 }
 0x4f5   : > { %v928_v40 = vadd.f32 1e-05, %v926_v39 }
 0x4f6   : > { %v934_v44 = vmul.f32 %v1409_v35, %v933_v42 }
 0x4f7   : > { %1410 = vrsqrt.f32 %v928_v40  ;;  %vm945_vm12 = vweird.f32 %v928_v40 }
 0x4f8   : > { %v938_v47 = vsel %vm937_vm10, %v1409_v35, %v934_v44 }
 0x4f9   : > { %v949_v51 = vmul.f32 %v938_v47, %v915_v22 }
 0x4fb   : > { %v952_v55 = vmul.f32 %v1368_v50, %v949_v51 }
 0x4fd   : > { %v1411_v43 = vpop.eup %1410  ;;  %v955_v58 = vadd.f32 %v1369_v54, %v952_v55 }
 0x4fe   : > { %v940_v45 = vmul.f32 %v1411_v43, %v928_v40  ;;  %vm946_vm11 = vweird.f32 %v1411_v43 }
 0x4ff   : > { %vm947_vm13 = vmor %vm945_vm12, %vm946_vm11 }
 0x500   : > { %v941_v46 = vmul.f32 %v1411_v43, %v940_v45 }
 0x502   : > { %v942_v48 = vmul.f32 0.5, %v941_v46  ;;  %v1373_v46 = vld [vmem:[%s1604_s27 + $0x6] ss:$0 sm:$0xff] }
 0x504   : > { %v943_v49 = vsub.f32 1.5, %v942_v48 }
 0x506   : > { %v944_v52 = vmul.f32 %v1411_v43, %v943_v49 }
 0x508   : > { %v948_v53 = vsel %vm947_vm13, %v1411_v43, %v944_v52  ;;  %v1372_v43 = vld [vmem:[%s1604_s27 + $0x5] ss:$0 sm:$0xff]  ;;  %s1110_s27 = sshll.u32 %s1779_s6, 4  ;;  %s1111_s27 = int_to_ptr.hbm [resolvable:$true] %s1110_s27 }
 0x509   : > { %v950_v56 = vmul.f32 %v948_v53, %v916_v27 }
 0x50b   : > { %v953_v57 = vmul.f32 %v1368_v50, %v950_v56 }
 0x50d   : > { %v956_v59 = vadd.f32 %v1369_v54, %v953_v57 }
 0x50f   : > { %v957_v61 = vpack.c.bf16 %v956_v59, %v955_v58 }
 0x511   : > { %1275 = vmatmul.msk.bf16.vlgmr.msra.gmra.mxu0 %vm387_vm1, %v957_v61 }
 0x58e   : > { %v987_v1 = vpop.f32.mrf.mxu0 }
 0x58f   : > { %v988_v3 = vadd.f32 %v1370_v2, %v987_v1 }
 0x591   : > { %v992_v8 = vmax.f32 %v988_v3, 0.0 }
 0x596   : > { %v989_v6 = vpop.f32.mrf.mxu0 }
 0x597   : > { %v990_v7 = vadd.f32 %v1370_v2, %v989_v6 }
 0x599   : > { %v993_v9 = vmax.f32 %v990_v7, 0.0 }
 0x59b   : > { %v994_v10 = vpack.c.bf16 %v993_v9, %v992_v8 }
 0x59d   : > { %1292 = vmatmul.msk.bf16.vlgmr.msra.gmra.mxu1 %vm1028_vm14, %v994_v10 }
 0x61a   : > { %v1041_v12 = vpop.f32.mrf.mxu1 }
 0x61b   : > { %v1042_v18 = vadd.f32 %v1371_v11, %v1041_v12 }
 0x61d   : > { %v1046_v23 = vadd.f32 %v1042_v18, %v955_v58 }
 0x61f   : > { %v1048_v13 = vsel %vm387_vm1, %v1046_v23, 0.0 }
 0x620   : > { %1049 = vadd.xlane.f32.xlu0 %v1048_v13 }
 0x622   : > { %v1043_v14 = vpop.f32.mrf.mxu1 }
 0x623   : > { %v1044_v15 = vadd.f32 %v1371_v11, %v1043_v14 }
 0x625   : > { %v1047_v4 = vadd.f32 %v1044_v15, %v956_v59 }
 0x627   : > { %v1051_v16 = vsel %vm387_vm1, %v1047_v4, 0.0 }
 0x628   : > { %1052 = vadd.xlane.f32.xlu1 %v1051_v16 }
 0x693   : > { %v1050_v17 = vpop.xlane.xlu0 %1049 }
 0x694   : > { %v1054_v20 = vmul.f32 %v1050_v17, %v1727_v19 }
 0x696   : > { %v1056_v21 = vsub.f32 %v1046_v23, %v1054_v20 }
 0x698   : > { %v1058_v22 = vmul.f32 %v1056_v21, %v1056_v21 }
 0x69a   : > { %v1060_v5 = vsel %vm387_vm1, %v1058_v22, 0.0 }
 0x69b   : > { %v1053_v24 = vpop.xlane.xlu1 %1052  ;;  %1061 = vadd.xlane.f32.xlu0 %v1060_v5 }
 0x69c   : > { %v1055_v25 = vmul.f32 %v1053_v24, %v1727_v19 }
 0x69e   : > { %v1057_v26 = vsub.f32 %v1047_v4, %v1055_v25 }
 0x6a0   : > { %v1059_v27 = vmul.f32 %v1057_v26, %v1057_v26 }
 0x6a2   : > { %v1063_v28 = vsel %vm387_vm1, %v1059_v27, 0.0 }
 0x6a3   : > { %1064 = vadd.xlane.f32.xlu1 %v1063_v28 }
 0x70e   : > { %v1062_v29 = vpop.xlane.xlu0 %1061 }
 0x70f   : > { %v1066_v30 = vmul.f32 %v1062_v29, %v1727_v19 }
 0x711   : > { %v1068_v31 = vadd.f32 1e-05, %v1066_v30 }
 0x713   : > { %1412 = vrsqrt.f32 %v1068_v31  ;;  %vm1076_vm0 = vweird.f32 %v1068_v31 }
 0x716   : > { %v1065_v32 = vpop.xlane.xlu1 %1064 }
 0x717   : > { %v1067_v33 = vmul.f32 %v1065_v32, %v1727_v19 }
 0x719   : > { %v1413_v34 = vpop.eup %1412  ;;  %v1069_v35 = vadd.f32 1e-05, %v1067_v33 }
 0x71a   : > { %v1071_v36 = vmul.f32 %v1413_v34, %v1068_v31  ;;  %vm1077_vm15 = vweird.f32 %v1413_v34 }
 0x71b   : > { %1414 = vrsqrt.f32 %v1069_v35  ;;  %vm1078_vm2 = vmor %vm1076_vm0, %vm1077_vm15  ;;  %vm1086_vm4 = vweird.f32 %v1069_v35 }
 0x71c   : > { %v1072_v37 = vmul.f32 %v1413_v34, %v1071_v36 }
 0x71e   : > { %v1073_v38 = vmul.f32 0.5, %v1072_v37 }
 0x720   : > { %v1074_v39 = vsub.f32 1.5, %v1073_v38 }
 0x721   : > { %v1415_v40 = vpop.eup %1414 }
 0x722   : > { %v1075_v41 = vmul.f32 %v1413_v34, %v1074_v39  ;;  %v1081_v42 = vmul.f32 %v1415_v40, %v1069_v35  ;;  %vm1087_vm3 = vweird.f32 %v1415_v40 }
 0x723   : > { %vm1088_vm5 = vmor %vm1086_vm4, %vm1087_vm3 }
 0x724   : > { %v1079_v44 = vsel %vm1078_vm2, %v1413_v34, %v1075_v41  ;;  %v1082_v45 = vmul.f32 %v1415_v40, %v1081_v42 }
 0x725   : > { %v1090_v47 = vmul.f32 %v1079_v44, %v1056_v21 }
 0x726   : > { %v1083_v19 = vmul.f32 0.5, %v1082_v45 }
 0x727   : > { %v1093_v48 = vmul.f32 %v1372_v43, %v1090_v47 }
 0x728   : > { %v1084_v49 = vsub.f32 1.5, %v1083_v19 }
 0x729   : > { %v1096_v50 = vadd.f32 %v1373_v46, %v1093_v48 }
 0x72a   : > { %v1085_v51 = vmul.f32 %v1415_v40, %v1084_v49 }
 0x72b   : > { %1098 = vst.msk [vmem:[#allocation5] sm:$0xff] %vm387_vm1, %v1096_v50 }
 0x72c   : > { %v1089_v52 = vsel %vm1088_vm5, %v1415_v40, %v1085_v51 }
 0x72d   : > { %v1091_v53 = vmul.f32 %v1089_v52, %v1057_v26 }
 0x72f   : > { %v1094_v54 = vmul.f32 %v1372_v43, %v1091_v53 }
 0x731   : > { %v1097_v55 = vadd.f32 %v1373_v46, %v1094_v54 }
 0x733   : > { %1099 = vst.msk [vmem:[#allocation5 + $0x8] sm:$0xff] %vm387_vm1, %v1097_v55 }
 0x734   : > { %1313 = dma.vmem_to_hbm [thread:$0]  (%p1322_p9), %s1109_s18, 256, %s1111_s27, [#allocation4], %s1524_s8, %s1524_s8, %s1519_s20  }
 0x735   : > { %1491 = dma.done.wait (%p1322_p9), [#allocation4], 256  }
 0x736   : > { %1493 = vsyncadd (%p1322_p9), [#allocation4], 4294967040 }
 0x737 PF: > { %s18_s23 = sadd.s32 1, %s1504_s23   ;;  %s1780_s21 = smov %s1500_s22 }
 0x738   : > { %p15_p10 = scmp.ge.s32.totalorder %s18_s23, 4   ;;  %s1781_s22 = smov %s1783_s25 }
 0x73a   :  { %17 = sbr.rel (!%p15_p10) target bundleno = 3 (0x3), region = 93 }
 0x73f   :  { %1127 = vsyncpa [#allocation3], 1 }
 0x740   :  { %1129 = vsyncpa [#allocation3 + $0x1], 1 }
 0x741   :  { %1130 = vsyncpa [#allocation4], 1 }
 0x742   :  { %1132 = vsyncpa [#allocation4 + $0x1], 1 }

</bundles_post_ra>
